<compile_context>
chip_gen: v7x
topology: tpu7x:2x2x1
jax: 0.10.0
libtpu: 0.0.40
codegen_flags: <defaults>
</compile_context>

<pallas_src>
import functools
import math

import numpy as np
import jax
import jax.numpy as jnp
from jax import lax
from jax.experimental import pallas as pl
from jax.experimental.pallas import tpu as pltpu


def _round_up(x, m):
    return ((x + m - 1) // m) * m


# ----------------------------------------------------------------------------
# Parameter construction (same math as ConsPosiEmb.get_embedding)
# ----------------------------------------------------------------------------
def get_embedding(num_cons, embedding_dim, padding_idx=None, startpos=1024):
    half_dim = embedding_dim // 2
    scale = math.log(10000.0) / (half_dim - 1)
    freqs = np.exp(np.arange(half_dim, dtype=np.float32) * -scale)
    ang = np.arange(startpos, startpos + num_cons, dtype=np.float32)[:, None] * freqs[None, :]
    emb = np.concatenate([np.sin(ang), np.cos(ang)], axis=1).reshape(num_cons, -1)
    if embedding_dim % 2 == 1:
        emb = np.concatenate([emb, np.zeros((num_cons, 1), dtype=np.float32)], axis=1)
    if padding_idx is not None:
        emb[padding_idx, :] = 0.0
    return emb.astype(np.float32)


# ----------------------------------------------------------------------------
# Host-side glue: turn the (rows, cols) separator index tuple into a dense
# per-token adjustment, reproducing:
#   diff = cols.clone(); diff[1:] -= cols[:-1]; diff[cols == 0] = 0
#   cons_pos[rows, cols] -= diff
# TODO(synk): torch.nonzero + variable-length diff have data-dependent shape, so
# they are precomputed on the host rather than inside the kernel.
# ----------------------------------------------------------------------------
def build_sep_adjustment(shape, cons_sep_mask):
    rows = np.asarray(cons_sep_mask[0], dtype=np.int64)
    cols = np.asarray(cons_sep_mask[1], dtype=np.int64)
    diff = cols.copy()
    if diff.size > 0:
        diff[1:] -= cols[:-1]
        diff[cols == 0] = 0
    adj = np.zeros(shape, dtype=np.int32)
    np.add.at(adj, (rows, cols), diff.astype(np.int32))
    return adj


# ----------------------------------------------------------------------------
# In-kernel inclusive prefix sum along the lane (last) axis.
# Hillis-Steele log-step scan.  When S is 128-aligned the shifted operand comes
# from pltpu.roll (XLU slot — free next to the VPU adds) masked against a lane
# iota; otherwise (small / ragged S) the proven concat-shift form is used.
# ----------------------------------------------------------------------------
def _inclusive_row_cumsum(x):
    tb, s = x.shape
    use_roll = (s % 128 == 0)
    if use_roll:
        lane = lax.broadcasted_iota(jnp.int32, (tb, s), 1)   # hoisted once
    shift = 1
    while shift < s:
        if use_roll:
            shifted = jnp.where(lane >= shift, pltpu.roll(x, shift, axis=1), 0)
        else:
            shifted = jnp.concatenate(
                [jnp.zeros((tb, shift), x.dtype), x[:, : s - shift]], axis=1)
        x = x + shifted
        shift *= 2
    return x


# ----------------------------------------------------------------------------
# Pallas kernel: one block of TB batch rows (full seq) per grid step.
# ----------------------------------------------------------------------------
def _cons_posi_emb_kernel(padding_idx, inp_ref, adj_ref, w_ref, out_ref):
    tok = inp_ref[...]                                    # (TB, S) int32
    adj = adj_ref[...]                                    # (TB, S) int32
    w = w_ref[...]                                        # (Kp, D) f32
    tb, s = tok.shape
    kp = w.shape[0]

    # --- positions (cheap VPU int32 work) -------------------------------------
    pad_mask = (tok != padding_idx).astype(jnp.int32)     # (TB, S)
    cons = pad_mask - adj                                 # (TB, S)
    csum = _inclusive_row_cumsum(cons)                    # inclusive cumsum over S
    pos = csum * pad_mask + 1                             # (TB, S) position ids

    # --- fused embedding gather as ONE one-hot MXU matmul ---------------------
    # Flatten positions into a single (1, TB*S) lane row via lane-concat of row
    # slices (relayout-free), build the transposed one-hot with one broadcast
    # compare, and contract with the (Kp, D) table in a single dot_general:
    # M = TB*S fills the MXU instead of TB tiny M=S matmuls.
    # TODO(synk): for very long sequences, window the Kp contraction around
    # [min(pos), max(pos)] of the block (or compute the sinusoid directly) to cut
    # the O(TB*S*Kp) one-hot VPU work; skipped here to stay bit-exact vs. the
    # f32 table reference.
    pos_row = jnp.concatenate([pos[b:b + 1, :] for b in range(tb)], axis=1)  # (1, TB*S)
    iota_k = lax.broadcasted_iota(jnp.int32, (kp, tb * s), 0)
    onehot_t = (iota_k == pos_row).astype(jnp.float32)    # (Kp, TB*S)
    emb = lax.dot_general(
        onehot_t, w,
        dimension_numbers=(((0,), (0,)), ((), ())),
        preferred_element_type=jnp.float32)               # (TB*S, D)
    out_ref[...] = emb.astype(out_ref.dtype)


# ----------------------------------------------------------------------------
# Block-row choice: multiple of 8, bounded by a VMEM budget, and small enough
# that the "parallel" grid axis still has >= 2 steps when bsz allows (keeps both
# v7x TensorCores busy; harmless on 1-TC v5e/v6e).
# ----------------------------------------------------------------------------
def _choose_block_rows(bsz, seq, d, kp, vmem_budget_bytes=24 << 20):
    # Per batch row a grid step holds roughly (bytes):
    #   2*(S*D*4) double-buffered output + (S*D*4) f32 matmul result
    #   + (S*Kp*4) transposed one-hot + 2*2*(S*4) tokens/adjustment
    per_row = seq * (3 * d + kp + 4) * 4
    tb = max(8, min(256, vmem_budget_bytes // max(per_row, 1)))
    tb = max(8, (tb // 8) * 8)
    b8 = _round_up(bsz, 8)
    if b8 >= 16:
        tb = min(tb, max(8, (b8 // 16) * 8))   # guarantee >= 2 grid steps
    return max(8, min(tb, b8))


def cons_posi_emb_forward(tokens, sep_adjust, weights, padding_idx, *, block_rows=None):
    """tokens: [bsz, seq] int32, sep_adjust: [bsz, seq] int32, weights: [P, D] f32."""
    tokens = jnp.asarray(tokens, jnp.int32)
    sep_adjust = jnp.asarray(sep_adjust, jnp.int32)
    bsz, seq = tokens.shape

    # Mirror the module's rebuild branch if the table is too small.
    weights = np.asarray(weights, np.float32)
    max_pos = padding_idx + 1 + seq
    if weights.shape[0] < max_pos:
        weights = get_embedding(max_pos, weights.shape[1], padding_idx)
    P, D = weights.shape

    # Well-formed positions live in [0, seq+1]; keep every table row up to the
    # next multiple of 128 and zero-pad so the MXU contraction dim is aligned.
    k_used = min(P, _round_up(seq + 2, 128))
    Kp = _round_up(k_used, 128)
    w_pad = np.zeros((Kp, D), np.float32)
    w_pad[:k_used] = weights[:k_used]
    w_pad = jnp.asarray(w_pad)

    TB = block_rows if block_rows is not None else _choose_block_rows(bsz, seq, D, Kp)
    B = _round_up(bsz, TB)
    if B != bsz:
        # Padding rows are all padding_idx -> pos=1 -> zero embedding; sliced off.
        tokens = jnp.pad(tokens, ((0, B - bsz), (0, 0)), constant_values=padding_idx)
        sep_adjust = jnp.pad(sep_adjust, ((0, B - bsz), (0, 0)))

    kernel = functools.partial(_cons_posi_emb_kernel, padding_idx)

    # Explicit VMEM limit: per-step working set + double-buffered weights + slack.
    step_bytes = TB * seq * (3 * D + Kp + 4) * 4 + 2 * Kp * D * 4
    vmem_limit = int(min(100 << 20, max(32 << 20, 2 * step_bytes)))

    cost = pl.CostEstimate(
        flops=2 * B * seq * Kp * D,
        transcendentals=0,
        bytes_accessed=2 * B * seq * 4 + Kp * D * 4 + B * seq * D * 4,
    )

    out_flat = pl.pallas_call(
        kernel,
        out_shape=jax.ShapeDtypeStruct((B * seq, D), jnp.float32),
        grid=(B // TB,),
        in_specs=[
            pl.BlockSpec((TB, seq), lambda b: (b, 0)),
            pl.BlockSpec((TB, seq), lambda b: (b, 0)),
            # Constant-index weights block; small after K-padding, so default
            # double-buffering is a negligible VMEM cost.
            pl.BlockSpec((Kp, D), lambda b: (0, 0)),
        ],
        out_specs=pl.BlockSpec((TB * seq, D), lambda b: (b, 0)),
        compiler_params=pltpu.CompilerParams(
            dimension_semantics=("parallel",),
            vmem_limit_bytes=vmem_limit,
        ),
        cost_estimate=cost,
    )(tokens, sep_adjust, w_pad)

    return out_flat.reshape(B, seq, D)[:bsz]


# ----------------------------------------------------------------------------
# Pure-numpy reference (mirrors the PyTorch forward exactly) for verification.
# ----------------------------------------------------------------------------
def ref_forward(tokens_np, cons_sep_mask, weights_np, padding_idx):
    rows = np.asarray(cons_sep_mask[0], dtype=np.int64)
    cols = np.asarray(cons_sep_mask[1], dtype=np.int64)
    diff = cols.copy()
    if diff.size > 0:
        diff[1:] -= cols[:-1]
        diff[cols == 0] = 0
    pad_mask = (tokens_np != padding_idx).astype(np.int64)
    cons_pos = pad_mask.copy()
    cons_pos[rows, cols] -= diff
    pos = np.cumsum(cons_pos, axis=1) * pad_mask + 1
    bsz, seq = tokens_np.shape
    return weights_np[pos.reshape(-1)].reshape(bsz, seq, -1)


if __name__ == "__main__":
    bsz, seq, embedding_dim = 2, 8, 128   # D=128 -> lane-dense output stores
    padding_idx = 1
    sep_id = 5
    init_size = 50   # init_size >= padding_idx + 1 + seq, so no rebuild branch

    # Deterministic synthetic inputs (writable numpy copy of the jax draw).
    key = jax.random.PRNGKey(0)
    tokens = np.array(jax.random.randint(key, (bsz, seq), 2, 5), dtype=np.int32)
    tokens[0, 2] = sep_id
    tokens[0, 4] = sep_id
    tokens[1, 3] = sep_id
    tokens[1, 6] = sep_id
    tokens[:, -1] = padding_idx

    # cons_sep_mask as in the reference usage: nonzero positions of the sep token.
    cons_sep_mask = np.nonzero(tokens == sep_id)

    # Deterministic "parameters" (the module's sinusoidal buffer, startpos=1024).
    weights = get_embedding(init_size, embedding_dim, padding_idx, startpos=1024)

    # Host glue for the data-dependent scatter, then run the kernel.
    sep_adjust = build_sep_adjustment(tokens.shape, cons_sep_mask)
    out = cons_posi_emb_forward(jnp.asarray(tokens), jnp.asarray(sep_adjust),
                                weights, padding_idx)
    out = jax.block_until_ready(out)

    ref = ref_forward(tokens, cons_sep_mask, weights, padding_idx)
    assert out.shape == (bsz, seq, embedding_dim)
    assert np.allclose(np.asarray(out), ref, atol=1e-5), "kernel output mismatch"
    print("KERNEL_OK")
</pallas_src>

<mosaic_0001>
module attributes {stable_mosaic.version = 11 : i64} {
  func.func @_cons_posi_emb_kernel(%arg0: i32, %arg1: memref<8x8xi32, #tpu.memory_space<vmem>>, %arg2: memref<8x8xi32, #tpu.memory_space<vmem>>, %arg3: memref<128x128xf32, #tpu.memory_space<vmem>>, %arg4: memref<64x128xf32, #tpu.memory_space<vmem>>) attributes {dimension_semantics = [#tpu.dimension_semantics<parallel>], iteration_bounds = array<i64: 1>, scalar_prefetch = 0 : i64, scratch_operands = 0 : i64, tpu.core_type = #tpu.core_type<tc>, window_params = [{transform_indices = @transform_0, window_bounds = array<i64: 8, 8>}, {transform_indices = @transform_1, window_bounds = array<i64: 8, 8>}, {pipeline_mode = #tpu.pipeline_mode<synchronous>, transform_indices = @transform_2, window_bounds = array<i64: 128, 128>}, {transform_indices = @transform_3, window_bounds = array<i64: 64, 128>}]} {
    %c0 = arith.constant 0 : index
    %c0_0 = arith.constant 0 : index
    %0 = vector.load %arg1[%c0, %c0_0] : memref<8x8xi32, #tpu.memory_space<vmem>>, vector<8x8xi32>
    %c0_1 = arith.constant 0 : index
    %c0_2 = arith.constant 0 : index
    %1 = vector.load %arg2[%c0_1, %c0_2] : memref<8x8xi32, #tpu.memory_space<vmem>>, vector<8x8xi32>
    %c0_3 = arith.constant 0 : index
    %c0_4 = arith.constant 0 : index
    %2 = vector.load %arg3[%c0_3, %c0_4] : memref<128x128xf32, #tpu.memory_space<vmem>>, vector<128x128xf32>
    %c1_i32 = arith.constant 1 : i32
    %3 = vector.broadcast %c1_i32 : i32 to vector<8x8xi32>
    %4 = arith.cmpi ne, %0, %3 : vector<8x8xi32>
    %5 = arith.extui %4 : vector<8x8xi1> to vector<8x8xi32>
    %6 = arith.subi %5, %1 : vector<8x8xi32>
    %c0_i32 = arith.constant 0 : i32
    %7 = vector.broadcast %c0_i32 : i32 to vector<8x1xi32>
    %8 = vector.extract_strided_slice %6 {offsets = [0, 0], sizes = [8, 7], strides = [1, 1]} : vector<8x8xi32> to vector<8x7xi32>
    %9 = tpu.concatenate %7, %8 in 1 : vector<8x1xi32>, vector<8x7xi32> -> vector<8x8xi32>
    %10 = arith.addi %6, %9 : vector<8x8xi32>
    %c0_i32_5 = arith.constant 0 : i32
    %11 = vector.broadcast %c0_i32_5 : i32 to vector<8x2xi32>
    %12 = vector.extract_strided_slice %10 {offsets = [0, 0], sizes = [8, 6], strides = [1, 1]} : vector<8x8xi32> to vector<8x6xi32>
    %13 = tpu.concatenate %11, %12 in 1 : vector<8x2xi32>, vector<8x6xi32> -> vector<8x8xi32>
    %14 = arith.addi %10, %13 : vector<8x8xi32>
    %c0_i32_6 = arith.constant 0 : i32
    %15 = vector.broadcast %c0_i32_6 : i32 to vector<8x4xi32>
    %16 = vector.extract_strided_slice %14 {offsets = [0, 0], sizes = [8, 4], strides = [1, 1]} : vector<8x8xi32> to vector<8x4xi32>
    %17 = tpu.concatenate %15, %16 in 1 : vector<8x4xi32>, vector<8x4xi32> -> vector<8x8xi32>
    %18 = arith.addi %14, %17 : vector<8x8xi32>
    %19 = arith.muli %18, %5 : vector<8x8xi32>
    %c1_i32_7 = arith.constant 1 : i32
    %20 = vector.broadcast %c1_i32_7 : i32 to vector<8x8xi32>
    %21 = arith.addi %19, %20 : vector<8x8xi32>
    %22 = vector.extract_strided_slice %21 {offsets = [0, 0], sizes = [1, 8], strides = [1, 1]} : vector<8x8xi32> to vector<1x8xi32>
    %23 = vector.extract_strided_slice %21 {offsets = [1, 0], sizes = [1, 8], strides = [1, 1]} : vector<8x8xi32> to vector<1x8xi32>
    %24 = vector.extract_strided_slice %21 {offsets = [2, 0], sizes = [1, 8], strides = [1, 1]} : vector<8x8xi32> to vector<1x8xi32>
    %25 = vector.extract_strided_slice %21 {offsets = [3, 0], sizes = [1, 8], strides = [1, 1]} : vector<8x8xi32> to vector<1x8xi32>
    %26 = vector.extract_strided_slice %21 {offsets = [4, 0], sizes = [1, 8], strides = [1, 1]} : vector<8x8xi32> to vector<1x8xi32>
    %27 = vector.extract_strided_slice %21 {offsets = [5, 0], sizes = [1, 8], strides = [1, 1]} : vector<8x8xi32> to vector<1x8xi32>
    %28 = vector.extract_strided_slice %21 {offsets = [6, 0], sizes = [1, 8], strides = [1, 1]} : vector<8x8xi32> to vector<1x8xi32>
    %29 = vector.extract_strided_slice %21 {offsets = [7, 0], sizes = [1, 8], strides = [1, 1]} : vector<8x8xi32> to vector<1x8xi32>
    %30 = tpu.concatenate %22, %23, %24, %25, %26, %27, %28, %29 in 1 : vector<1x8xi32>, vector<1x8xi32>, vector<1x8xi32>, vector<1x8xi32>, vector<1x8xi32>, vector<1x8xi32>, vector<1x8xi32>, vector<1x8xi32> -> vector<1x64xi32>
    %31 = tpu.iota {dimensions = array<i32: 0>} : vector<128x64xi32>
    %32 = vector.broadcast %30 : vector<1x64xi32> to vector<128x64xi32>
    %33 = arith.cmpi eq, %31, %32 : vector<128x64xi32>
    %34 = arith.extui %33 : vector<128x64xi1> to vector<128x64xi32>
    %35 = arith.sitofp %34 : vector<128x64xi32> to vector<128x64xf32>
    %cst = arith.constant dense<0.000000e+00> : vector<64x128xf32>
    %36 = tpu.matmul %35, %2, %cst {dimension_numbers = #tpu.dot_dimension_numbers<[0], [0], [1], [1], [0, 1, 1, 1], [], []>} : vector<128x64xf32>, vector<128x128xf32>, vector<64x128xf32> -> vector<64x128xf32>
    %c0_8 = arith.constant 0 : index
    %c0_9 = arith.constant 0 : index
    %37 = vector.load %arg4[%c0_8, %c0_9] : memref<64x128xf32, #tpu.memory_space<vmem>>, vector<64x128xf32>
    tpu.vector_store %arg4[%c0_8, %c0_9], %36 {strides = array<i32>} : memref<64x128xf32, #tpu.memory_space<vmem>>, vector<64x128xf32>,
    return
  }
  func.func @transform_0(%arg0: i32) -> (i32, i32) {
    %c0_i32 = arith.constant 0 : i32
    %c0_i32_0 = arith.constant 0 : i32
    return %arg0, %c0_i32 : i32, i32
  }
  func.func @transform_1(%arg0: i32) -> (i32, i32) {
    %c0_i32 = arith.constant 0 : i32
    %c0_i32_0 = arith.constant 0 : i32
    return %arg0, %c0_i32 : i32, i32
  }
  func.func @transform_2(%arg0: i32) -> (i32, i32) {
    %c0_i32 = arith.constant 0 : i32
    %c0_i32_0 = arith.constant 0 : i32
    %c0_i32_1 = arith.constant 0 : i32
    return %c0_i32, %c0_i32_0 : i32, i32
  }
  func.func @transform_3(%arg0: i32) -> (i32, i32) {
    %c0_i32 = arith.constant 0 : i32
    %c0_i32_0 = arith.constant 0 : i32
    return %arg0, %c0_i32 : i32, i32
  }
}

</mosaic_0001>

<bundles_post_ra>
// kernel: tpu_custom_call.1
= control target key start
LH: loop header
LB: loop body
LE: loop exit
PB: predicated region body
PF: predicated region fallthrough
CT: control target
= control target key end

     0   :  { %8 = vsyncpa [#allocation3], 0  ;;  %s755_s0 = inlined_call_operand.hbm [shape: s32[8,8], index: 0, kind: input, shape index: {}]   ;;  %s756_s1 = inlined_call_operand.hbm [shape: s32[8,8], index: 1, kind: input, shape index: {}]   ;;  %s757_s2 = inlined_call_operand.hbm [shape: f32[128,128], index: 2, kind: input, shape index: {}]   ;;  %s758_s3 = inlined_call_operand.hbm [shape: f32[64,128], index: 3, kind: output, shape index: {}]  }
   0x1   :  { %9 = vsyncpa [#allocation6], 0 }
   0x2   :  { %10 = vsyncpa [#allocation4], 0  ;;  %s600_s12 = smov [#allocation5]   ;;  %s601_s14 = smov [#allocation2]  }
   0x3   :  { %s27_s13 = sshll.u32 %s600_s12, 4  ;;  %s17_s15 = sshll.u32 %s601_s14, 4  ;;  %s28_s13 = int_to_ptr.vmem [resolvable:$true] %s27_s13  ;;  %s18_s15 = int_to_ptr.vmem [resolvable:$true] %s17_s15 }
   0x4   :  { %s506_s18 = scalar_lea.hbm %s756_s1, 128 }
   0x5   :  { %p507_p0 = scmp.ne.s32.totalorder %s756_s1, %s506_s18  ;;  %p510_p1 = scmp.lt.u32.totalorder %s506_s18, %s756_s1 }
   0x7   :  { %p512_p2 = pnand %p510_p1, %p507_p0 }
   0x9   :  { %515 = shalt.err (!%p512_p2)
}
   0xa   :  { %s516_s23 = scalar_lea.vmem %s28_s13, 128  ;;  %p521_p4 = scmp.lt.s32.totalorder %s28_s13, %s28_s13 }
   0xb   :  { %p517_p3 = scmp.ne.s32.totalorder %s28_s13, %s516_s23  ;;  %p522_p5 = scmp.lt.s32.totalorder %s516_s23, %s516_s23 }
   0xd   :  { %p523_p6 = por %p522_p5, %p521_p4 }
   0xf   :  { %p524_p7 = pnand %p523_p6, %p517_p3 }
  0x11   :  { %527 = shalt.err (!%p524_p7)
}
  0x12   :  { %30 = dma.hbm_to_vmem [thread:$0]  %s756_s1, 128, %s28_s13, [#allocation6]  }
  0x13   :  { %s528_s28 = scalar_lea.hbm %s755_s0, 128 }
  0x14   :  { %p529_p8 = scmp.ne.s32.totalorder %s755_s0, %s528_s28  ;;  %p532_p9 = scmp.lt.u32.totalorder %s528_s28, %s755_s0 }
  0x16   :  { %p534_p10 = pnand %p532_p9, %p529_p8 }
  0x18   :  { %537 = shalt.err (!%p534_p10)
}
  0x19   :  { %s538_s6 = scalar_lea.vmem %s18_s15, 128  ;;  %p543_p12 = scmp.lt.s32.totalorder %s18_s15, %s18_s15 }
  0x1a   :  { %p539_p11 = scmp.ne.s32.totalorder %s18_s15, %s538_s6  ;;  %p544_p13 = scmp.lt.s32.totalorder %s538_s6, %s538_s6 }
  0x1c   :  { %p545_p0 = por %p544_p13, %p543_p12 }
  0x1e   :  { %p546_p1 = pnand %p545_p0, %p539_p11 }
  0x20   :  { %549 = shalt.err (!%p546_p1)
}
  0x21   :  { %20 = dma.hbm_to_vmem [thread:$0]  %s755_s0, 128, %s18_s15, [#allocation3]  }
  0x22   :  { %s602_s8 = smov [#allocation7]   ;;  %s550_s12 = scalar_lea.hbm %s757_s2, 2048 }
  0x23   :  { %s36_s9 = sshll.u32 %s602_s8, 4  ;;  %p551_p2 = scmp.ne.s32.totalorder %s757_s2, %s550_s12  ;;  %s37_s9 = int_to_ptr.vmem [resolvable:$true] %s36_s9 }
  0x24   :  { %p554_p3 = scmp.lt.u32.totalorder %s550_s12, %s757_s2 }
  0x26   :  { %p556_p4 = pnand %p554_p3, %p551_p2 }
  0x28   :  { %559 = shalt.err (!%p556_p4)
}
  0x29   :  { %s560_s18 = scalar_lea.vmem %s37_s9, 2048  ;;  %p565_p6 = scmp.lt.s32.totalorder %s37_s9, %s37_s9 }
  0x2a   :  { %p561_p5 = scmp.ne.s32.totalorder %s37_s9, %s560_s18  ;;  %p566_p7 = scmp.lt.s32.totalorder %s560_s18, %s560_s18 }
  0x2c   :  { %p567_p8 = por %p566_p7, %p565_p6 }
  0x2e   :  { %p568_p9 = pnand %p567_p8, %p561_p5 }
  0x30   :  { %571 = shalt.err (!%p568_p9)
}
  0x31   :  { %s603_s0 = smov 128   ;;  %s604_s15 = smov 8  }
  0x32   :  { %42 = dma.hbm_to_vmem [thread:$0]  %s757_s2, 2048, %s37_s9, [#allocation6], %s603_s0, %s603_s0, %s604_s15  }
  0x33   :  { %594 = dma.done.wait [#allocation3], 128  }
  0x34   :  { %595 = vsyncadd [#allocation3], 4294967168 }
  0x35   :  { %596 = dma.done.wait [#allocation6], 2176  }
  0x36   :  { %597 = vsyncadd [#allocation6], 4294965120  ;;  %v52_v0 = vld [vmem:[#allocation2] sm:$0xff]  ;;  %v53_v1 = vld [vmem:[#allocation5] sm:$0xff]  ;;  %v605_v2 = vmov 0   ;;  %s606_s21 = smov 1   ;;  %v125_v47 = vlaneseq }
  0x37   :  { %vm70_vm0 = vcmp.ne.s32.totalorder %v52_v0, 1  ;;  %vm75_vm1 = vcmask 7168   ;;  %s607_s22 = smov 2   ;;  %vm80_vm2 = vcmask 15360   ;;  %s608_s2 = smov 4   ;;  %vm85_vm3 = vcmask 31744  }
  0x38   :  { %v71_v3 = vsel %vm70_vm0, 1, %v605_v2  ;;  %s609_s23 = smov 16   ;;  %s610_s24 = smov 32   ;;  %v54_v23 = vld [vmem:[#allocation7] sm:$0xff]  ;;  %v55_v24 = vld [vmem:[#allocation7 + $0x8] sm:$0xff]  ;;  %v56_v25 = vld [vmem:[#allocation7 + $0x10] sm:$0xff] }
  0x39   :  { %v72_v4 = vsub.s32 %v71_v3, %v53_v1  ;;  %s611_s25 = smov 24   ;;  %s612_s26 = smov 48   ;;  %v441_v26 = vpack.c.bf16 %v55_v24, %v54_v23  ;;  %v57_v27 = vld [vmem:[#allocation7 + $0x18] sm:$0xff]  ;;  %v58_v29 = vld [vmem:[#allocation7 + $0x20] sm:$0xff]  ;;  %v59_v30 = vld [vmem:[#allocation7 + $0x28] sm:$0xff]  ;;  %vm111_vm4 = vcmask 64512  }
  0x3a   :  { %s613_s27 = smov 40   ;;  %s614_s28 = smov 56   ;;  %v445_v28 = vpack.c.bf16 %v57_v27, %v56_v25  ;;  %v449_v31 = vpack.c.bf16 %v59_v30, %v58_v29  ;;  %v60_v32 = vld [vmem:[#allocation7 + $0x30] sm:$0xff]  ;;  %v61_v33 = vld [vmem:[#allocation7 + $0x38] sm:$0xff]  ;;  %v62_v35 = vld [vmem:[#allocation7 + $0x40] sm:$0xff]  ;;  %vm113_vm5 = vcmask 130048  }
  0x3b   :  { %73 = vrot.lane.b32.xlu0 %v72_v4, %s606_s21  ;;  %442 = vmatprep.subr.bf16.mxu0 %v441_v26  ;;  %v453_v34 = vpack.c.bf16 %v61_v33, %v60_v32  ;;  %v63_v36 = vld [vmem:[#allocation7 + $0x48] sm:$0xff]  ;;  %v64_v38 = vld [vmem:[#allocation7 + $0x50] sm:$0xff]  ;;  %v65_v39 = vld [vmem:[#allocation7 + $0x58] sm:$0xff]  ;;  %vm115_vm6 = vcmask 195584   ;;  %vm117_vm7 = vcmask 261120   ;;  %vm119_vm8 = vcmask 326656  }
  0x3c   :  { %473 = vmatprep.subr.bf16.mxu1 %v441_v26  ;;  %444 = vmatpush3.bf16.msra.mxu0 %v441_v26  ;;  %v457_v37 = vpack.c.bf16 %v63_v36, %v62_v35  ;;  %v461_v40 = vpack.c.bf16 %v65_v39, %v64_v38  ;;  %v66_v41 = vld [vmem:[#allocation7 + $0x60] sm:$0xff]  ;;  %v67_v42 = vld [vmem:[#allocation7 + $0x68] sm:$0xff]  ;;  %v687_v52 = vshrl.u32 %v125_v47, 7  ;;  %vm121_vm9 = vcmask 392192   ;;  %s616_s29 = smov [#allocation8]  }
  0x3d   :  { %481 = vmatpush3.bf16.msra.mxu1 %v441_v26  ;;  %446 = vmatprep.subr.bf16.mxu0 %v445_v28  ;;  %v465_v43 = vpack.c.bf16 %v67_v42, %v66_v41  ;;  %vm123_vm10 = vcmask 457728   ;;  %v615_v63 = vmov 0.0   ;;  %s344_s30 = sshll.u32 %s616_s29, 4  ;;  %s345_s30 = int_to_ptr.vmem [resolvable:$true] %s344_s30 }
  0x3e   :  { %474 = vmatprep.subr.bf16.mxu1 %v445_v28  ;;  %v144_v57 = vsub.s32 0, %v687_v52  ;;  %v127_v62 = vadd.s32 8, %v687_v52  ;;  %v128_v1 = vadd.s32 16, %v687_v52  ;;  %v138_v24 = vadd.s32 96, %v687_v52  ;;  %s572_s4 = scalar_lea.vmem %s345_s30, 1024  ;;  %p577_p11 = scmp.lt.s32.totalorder %s345_s30, %s345_s30 }
  0x3f   :  { %v139_v26 = vadd.s32 104, %v687_v52  ;;  %v141_v30 = vadd.s32 120, %v687_v52  ;;  %p573_p10 = scmp.ne.s32.totalorder %s345_s30, %s572_s4  ;;  %p578_p12 = scmp.lt.s32.totalorder %s572_s4, %s572_s4 }
  0x40   :  { %448 = vmatpush3.bf16.msra.mxu0 %v445_v28 }
  0x41   :  { %482 = vmatpush3.bf16.msra.mxu1 %v445_v28  ;;  %450 = vmatprep.subr.bf16.mxu0 %v449_v31  ;;  %v140_v28 = vadd.s32 112, %v687_v52  ;;  %p579_p13 = por %p578_p12, %p577_p11 }
  0x42   :  { %475 = vmatprep.subr.bf16.mxu1 %v449_v31 }
  0x43   :  { %p580_p0 = pnand %p579_p13, %p573_p10 }
  0x44   :  { %452 = vmatpush3.bf16.msra.mxu0 %v449_v31 }
  0x45   :  { %483 = vmatpush3.bf16.msra.mxu1 %v449_v31  ;;  %454 = vmatprep.subr.bf16.mxu0 %v453_v34 }
  0x46   :  { %476 = vmatprep.subr.bf16.mxu1 %v453_v34 }
  0x48   :  { %456 = vmatpush3.bf16.msra.mxu0 %v453_v34 }
  0x49   :  { %484 = vmatpush3.bf16.msra.mxu1 %v453_v34  ;;  %458 = vmatprep.subr.bf16.mxu0 %v457_v37 }
  0x4a   :  { %477 = vmatprep.subr.bf16.mxu1 %v457_v37 }
  0x4c   :  { %460 = vmatpush3.bf16.msra.mxu0 %v457_v37 }
  0x4d   :  { %485 = vmatpush3.bf16.msra.mxu1 %v457_v37  ;;  %462 = vmatprep.subr.bf16.mxu0 %v461_v40 }
  0x4e   :  { %478 = vmatprep.subr.bf16.mxu1 %v461_v40 }
  0x50   :  { %464 = vmatpush3.bf16.msra.mxu0 %v461_v40 }
  0x51   :  { %486 = vmatpush3.bf16.msra.mxu1 %v461_v40  ;;  %466 = vmatprep.subr.bf16.mxu0 %v465_v43 }
  0x52   :  { %479 = vmatprep.subr.bf16.mxu1 %v465_v43 }
  0x54   :  { %468 = vmatpush3.bf16.msra.mxu0 %v465_v43 }
  0x55   :  { %487 = vmatpush3.bf16.msra.mxu1 %v465_v43 }
  0xad   :  { %v74_v5 = vpop.permute.xlu0 %73 }
  0xae   :  { %v76_v6 = vsel %vm75_vm1, 0, %v74_v5  ;;  %v129_v5 = vadd.s32 24, %v687_v52 }
  0xaf   :  { %v77_v7 = vadd.s32 %v76_v6, %v72_v4  ;;  %v69_v4 = vld [vmem:[#allocation7 + $0x78] sm:$0xff] }
  0xb1   :  { %78 = vrot.lane.b32.xlu0 %v77_v7, %s607_s22 }
 0x123   :  { %v79_v8 = vpop.permute.xlu0 %78 }
 0x124   :  { %v81_v9 = vsel %vm80_vm2, 0, %v79_v8  ;;  %v130_v8 = vadd.s32 32, %v687_v52 }
 0x125   :  { %v82_v10 = vadd.s32 %v81_v9, %v77_v7 }
 0x127   :  { %83 = vrot.lane.b32.xlu1 %v82_v10, %s608_s2 }
 0x199   :  { %v84_v11 = vpop.permute.xlu1 %83 }
 0x19a   :  { %v86_v12 = vsel %vm85_vm3, 0, %v84_v11 }
 0x19b   :  { %v87_v13 = vadd.s32 %v86_v12, %v82_v10  ;;  %v131_v10 = vadd.s32 40, %v687_v52  ;;  %v132_v12 = vadd.s32 48, %v687_v52 }
 0x19d   :  { %v88_v14 = vmul.u32 %v87_v13, %v71_v3  ;;  %v68_v3 = vld [vmem:[#allocation7 + $0x70] sm:$0xff] }
 0x19e   :  { %v469_v6 = vpack.c.bf16 %v69_v4, %v68_v3 }
 0x19f   :  { %v676_v15 = vadd.s32 1, %v88_v14  ;;  %v133_v14 = vadd.s32 56, %v687_v52 }
 0x1a0   :  { %470 = vmatprep.subr.bf16.mxu0 %v469_v6  ;;  %480 = vmatprep.subr.bf16.mxu1 %v469_v6 }
 0x1a1   :  { %v93_v16 = vrot.slane %v676_v15, 2  ;;  %v90_v17 = vrot.slane %v676_v15, 1  ;;  %v99_v18 = vrot.slane %v676_v15, 4  ;;  %v96_v19 = vrot.slane %v676_v15, 3  ;;  %472 = vmatpush3.bf16.msra.mxu0 %v469_v6  ;;  %488 = vmatpush3.bf16.msra.mxu1 %v469_v6 }
 0x1a2   :  { %v105_v20 = vrot.slane %v676_v15, 6  ;;  %v102_v21 = vrot.slane %v676_v15, 5  ;;  %v108_v22 = vrot.slane %v676_v15, 7 }
 0x1a3   :  { %94 = vrot.lane.b32.xlu0 %v93_v16, %s609_s23  ;;  %91 = vrot.lane.b32.xlu1 %v90_v17, %s604_s15  ;;  %v134_v16 = vadd.s32 64, %v687_v52 }
 0x1a7   :  { %100 = vrot.lane.b32.xlu0 %v99_v18, %s610_s24  ;;  %97 = vrot.lane.b32.xlu1 %v96_v19, %s611_s25  ;;  %v135_v18 = vadd.s32 72, %v687_v52 }
 0x1ab   :  { %106 = vrot.lane.b32.xlu0 %v105_v20, %s612_s26  ;;  %103 = vrot.lane.b32.xlu1 %v102_v21, %s613_s27  ;;  %v136_v20 = vadd.s32 80, %v687_v52 }
 0x1af   :  { %109 = vrot.lane.b32.xlu1 %v108_v22, %s614_s28  ;;  %v137_v22 = vadd.s32 88, %v687_v52 }
 0x215   :  { %v95_v44 = vpop.permute.xlu0 %94  ;;  %v92_v45 = vpop.permute.xlu1 %91 }
 0x216   :  { %v112_v46 = vsel %vm111_vm4, %v676_v15, %v92_v45 }
 0x217   :  { %v114_v49 = vsel %vm113_vm5, %v112_v46, %v95_v44 }
 0x219   :  { %v101_v48 = vpop.permute.xlu0 %100  ;;  %v98_v50 = vpop.permute.xlu1 %97 }
 0x21a   :  { %v116_v51 = vsel %vm115_vm6, %v114_v49, %v98_v50 }
 0x21b   :  { %v118_v53 = vsel %vm117_vm7, %v116_v51, %v101_v48 }
 0x21d   :  { %v104_v54 = vpop.permute.xlu1 %103  ;;  %v107_v55 = vpop.permute.xlu0 %106 }
 0x21e   :  { %v120_v56 = vsel %vm119_vm8, %v118_v53, %v104_v54 }
 0x21f   :  { %v122_v58 = vsel %vm121_vm9, %v120_v56, %v107_v55 }
 0x221   :  { %v110_v59 = vpop.permute.xlu1 %109 }
 0x222   :  { %v124_v60 = vsel %vm123_vm10, %v122_v58, %v110_v59 }
 0x223   :  { %v690_v61 = vrot.slane %v124_v60, %v144_v57 }
 0x225   :  { %vm146_vm11 = vcmp.eq.s32.totalorder %v687_v52, %v690_v61  ;;  %vm147_vm12 = vcmp.eq.s32.totalorder %v127_v62, %v690_v61  ;;  %vm148_vm13 = vcmp.eq.s32.totalorder %v128_v1, %v690_v61  ;;  %vm149_vm14 = vcmp.eq.s32.totalorder %v129_v5, %v690_v61 }
 0x226   :  { %v357_v0 = vsel %vm146_vm11, 1.0, %v615_v63  ;;  %v358_v2 = vsel %vm147_vm12, 1.0, %v615_v63  ;;  %v359_v7 = vsel %vm148_vm13, 1.0, %v615_v63  ;;  %v360_v9 = vsel %vm149_vm14, 1.0, %v615_v63 }
 0x227   :  { %194 = vxpose.xlu0.b32.start [1/16] (narrow) %v357_v0, 64  ;;  %vm150_vm15 = vcmp.eq.s32.totalorder %v130_v8, %v690_v61  ;;  %vm151_vm0 = vcmp.eq.s32.totalorder %v131_v10, %v690_v61  ;;  %vm152_vm1 = vcmp.eq.s32.totalorder %v132_v12, %v690_v61  ;;  %vm153_vm2 = vcmp.eq.s32.totalorder %v133_v14, %v690_v61 }
 0x228   :  { %v361_v11 = vsel %vm150_vm15, 1.0, %v615_v63  ;;  %v362_v13 = vsel %vm151_vm0, 1.0, %v615_v63  ;;  %v363_v15 = vsel %vm152_vm1, 1.0, %v615_v63  ;;  %v364_v17 = vsel %vm153_vm2, 1.0, %v615_v63 }
 0x229   :  { %vm154_vm3 = vcmp.eq.s32.totalorder %v134_v16, %v690_v61  ;;  %vm155_vm4 = vcmp.eq.s32.totalorder %v135_v18, %v690_v61  ;;  %vm156_vm5 = vcmp.eq.s32.totalorder %v136_v20, %v690_v61  ;;  %vm157_vm6 = vcmp.eq.s32.totalorder %v137_v22, %v690_v61 }
 0x22a   :  { %v365_v19 = vsel %vm154_vm3, 1.0, %v615_v63  ;;  %v366_v21 = vsel %vm155_vm4, 1.0, %v615_v63  ;;  %v367_v23 = vsel %vm156_vm5, 1.0, %v615_v63  ;;  %v368_v25 = vsel %vm157_vm6, 1.0, %v615_v63 }
 0x22b   :  { %195 = vxpose.xlu0.b32.cont [2/16] (narrow) %v358_v2, 64  ;;  %vm158_vm7 = vcmp.eq.s32.totalorder %v138_v24, %v690_v61  ;;  %vm159_vm8 = vcmp.eq.s32.totalorder %v139_v26, %v690_v61  ;;  %vm160_vm9 = vcmp.eq.s32.totalorder %v140_v28, %v690_v61  ;;  %vm161_vm10 = vcmp.eq.s32.totalorder %v141_v30, %v690_v61 }
 0x22c   :  { %v369_v27 = vsel %vm158_vm7, 1.0, %v615_v63  ;;  %v370_v29 = vsel %vm159_vm8, 1.0, %v615_v63  ;;  %v371_v31 = vsel %vm160_vm9, 1.0, %v615_v63  ;;  %v372_v32 = vsel %vm161_vm10, 1.0, %v615_v63 }
 0x22f   :  { %196 = vxpose.xlu0.b32.cont [3/16] (narrow) %v359_v7, 64 }
 0x233   :  { %197 = vxpose.xlu0.b32.cont [4/16] (narrow) %v360_v9, 64 }
 0x237   :  { %198 = vxpose.xlu0.b32.cont [5/16] (narrow) %v361_v11, 64 }
 0x23b   :  { %199 = vxpose.xlu0.b32.cont [6/16] (narrow) %v362_v13, 64 }
 0x23f   :  { %200 = vxpose.xlu0.b32.cont [7/16] (narrow) %v363_v15, 64 }
 0x243   :  { %201 = vxpose.xlu0.b32.cont [8/16] (narrow) %v364_v17, 64 }
 0x247   :  { %202 = vxpose.xlu0.b32.cont [9/16] (narrow) %v365_v19, 64 }
 0x24b   :  { %203 = vxpose.xlu0.b32.cont [10/16] (narrow) %v366_v21, 64 }
 0x24f   :  { %204 = vxpose.xlu0.b32.cont [11/16] (narrow) %v367_v23, 64 }
 0x253   :  { %205 = vxpose.xlu0.b32.cont [12/16] (narrow) %v368_v25, 64 }
 0x257   :  { %206 = vxpose.xlu0.b32.cont [13/16] (narrow) %v369_v27, 64 }
 0x25b   :  { %207 = vxpose.xlu0.b32.cont [14/16] (narrow) %v370_v29, 64 }
 0x25f   :  { %208 = vxpose.xlu0.b32.cont [15/16] (narrow) %v371_v31, 64 }
 0x263   :  { %209 = vxpose.xlu0.b32.end [16/16] (narrow) %v372_v32, 64 }
 0x2a7   :  { %v210_v33 = vpop.trf.xlu0 }
 0x2a8   :  { %429 = vmatprep.mubr.f32.mxu0 %v210_v33 }
 0x2ab   :  { %v211_v34 = vpop.trf.xlu0 }
 0x2ac   :  { %430 = vmatmul.mubr.f32.vlgmr.msra.gmra.mrb[0].mxu0 %v211_v34 }
 0x2af   :  { %v212_v35 = vpop.trf.xlu0 }
 0x2b0   :  { %432 = vmatprep.mubr.f32.mxu0 %v212_v35 }
 0x2b3   :  { %v213_v36 = vpop.trf.xlu0 }
 0x2b4   :  { %433 = vmatmul.mubr.f32.gmra.mrb[2].mxu0 %v213_v36 }
 0x2b7   :  { %v214_v37 = vpop.trf.xlu0 }
 0x2b8   :  { %435 = vmatprep.mubr.f32.mxu1 %v214_v37 }
 0x2bb   :  { %v215_v38 = vpop.trf.xlu0 }
 0x2bc   :  { %436 = vmatmul.mubr.f32.vlgmr.msra.gmra.mrb[0].mxu1 %v215_v38 }
 0x2bf   :  { %v216_v39 = vpop.trf.xlu0 }
 0x2c0   :  { %438 = vmatprep.mubr.f32.mxu1 %v216_v39 }
 0x2c3   :  { %v217_v40 = vpop.trf.xlu0 }
 0x2c4   :  { %439 = vmatmul.mubr.f32.gmra.mrb[2].mxu1 %v217_v40 }
 0x37f   :  { %v431_v41 = vpop.f32.mrb[0].mxu0 }
 0x380   :  { %332 = vst [vmem:[#allocation8 + $0x8] sm:$0xff] %v431_v41  ;;  %v292_v42 = vpop.f32.mrb[1].mxu0 }
 0x381   :  { %331 = vst [vmem:[#allocation8] sm:$0xff] %v292_v42 }
 0x387   :  { %v434_v43 = vpop.f32.mrb[2].mxu0 }
 0x388   :  { %334 = vst [vmem:[#allocation8 + $0x18] sm:$0xff] %v434_v43  ;;  %v302_v44 = vpop.f32.mrb[3].mxu0 }
 0x389   :  { %333 = vst [vmem:[#allocation8 + $0x10] sm:$0xff] %v302_v44 }
 0x38f   :  { %v437_v45 = vpop.f32.mrb[0].mxu1 }
 0x390   :  { %336 = vst [vmem:[#allocation8 + $0x28] sm:$0xff] %v437_v45  ;;  %v312_v46 = vpop.f32.mrb[1].mxu1 }
 0x391   :  { %335 = vst [vmem:[#allocation8 + $0x20] sm:$0xff] %v312_v46 }
 0x397   :  { %v440_v47 = vpop.f32.mrb[2].mxu1 }
 0x398   :  { %338 = vst [vmem:[#allocation8 + $0x38] sm:$0xff] %v440_v47  ;;  %v322_v48 = vpop.f32.mrb[3].mxu1 }
 0x399   :  { %337 = vst [vmem:[#allocation8 + $0x30] sm:$0xff] %v322_v48 }
 0x39a   :  { %583 = shalt.err (!%p580_p0)
}
 0x39b   :  { %s584_s1 = scalar_lea.hbm %s758_s3, 1024 }
 0x39c   :  { %p585_p1 = scmp.ne.s32.totalorder %s758_s3, %s584_s1  ;;  %p588_p2 = scmp.lt.u32.totalorder %s584_s1, %s758_s3 }
 0x39e   :  { %p590_p3 = pnand %p588_p2, %p585_p1 }
 0x3a0   :  { %593 = shalt.err (!%p590_p3)
}
 0x3a1   :  { %350 = dma.vmem_to_hbm [thread:$0]  %s345_s30, 1024, %s758_s3, [#allocation4], %s603_s0, %s603_s0, %s604_s15  }
 0x3a2   :  { %598 = dma.done.wait [#allocation4], 1024  }
 0x3a3   :  { %599 = vsyncadd [#allocation4], 4294966272 }
 0x3a4   :  { %354 = vsyncpa [#allocation3], 1 }
 0x3a5   :  { %355 = vsyncpa [#allocation6], 1 }
 0x3a6   :  { %356 = vsyncpa [#allocation4], 1 }

</bundles_post_ra>
